<compile_context>
chip_gen: v7x
topology: tpu7x:2x2x1
jax: 0.10.0
libtpu: 0.0.40
codegen_flags: <defaults>
</compile_context>

<pallas_src>
import functools

import jax
import jax.numpy as jnp
from jax import lax
from jax.experimental import pallas as pl
from jax.experimental.pallas import tpu as pltpu


# ---------------------------------------------------------------------------
# Fused forward kernel
# ---------------------------------------------------------------------------

def _agnnet_fwd_kernel(x_ref, w1_ref, b1_ref, adj_ref, betas_ref,
                       w2_ref, b2_ref, o_ref, *, out_channels):
    neg = jnp.float32(-1e30)

    # ---- lin1 + ReLU -------------------------------------------------------
    h = jnp.dot(x_ref[...], w1_ref[...], preferred_element_type=jnp.float32)
    h = jnp.maximum(h + b1_ref[...], 0.0)                     # [N, H]

    # ---- adjacency (self loops included by the builder) --------------------
    adj = adj_ref[...] != 0                                   # bool [N, N]

    def agnn(h, beta):
        # AGNNConv: out[i] = sum_j softmax_j( beta * cos(h_i, h_j) ) * h_j
        sq = jnp.sum(h * h, axis=-1, keepdims=True)
        xn = h * lax.rsqrt(jnp.maximum(sq, 1e-24))            # F.normalize(p=2)
        # s[i, j] = beta * <xn_i, xn_j>  -- no explicit transpose (MXU-native)
        s = beta * lax.dot_general(xn, xn, (((1,), (1,)), ((), ())),
                                   preferred_element_type=jnp.float32)
        s = jnp.where(adj, s, neg)                            # mask non-edges
        m = jnp.max(s, axis=-1, keepdims=True)                # self-loops => finite
        p = jnp.exp(s - m)
        denom = jnp.sum(p, axis=-1, keepdims=True)
        a = p * pl.reciprocal(denom, approx=True)             # EUP reciprocal
        return jnp.dot(a, h, preferred_element_type=jnp.float32)

    h = agnn(h, betas_ref[0, 0])                              # prop1 (beta fixed)
    h = agnn(h, betas_ref[0, 1])                              # prop2 (beta learned)

    # ---- lin2 + log_softmax over the true out_channels columns -------------
    z = jnp.dot(h, w2_ref[...], preferred_element_type=jnp.float32) + b2_ref[...]
    col = lax.broadcasted_iota(jnp.int32, z.shape, 1)
    valid = col < out_channels                                # padded lanes masked
    zm = jnp.where(valid, z, neg)
    m = jnp.max(zm, axis=-1, keepdims=True)
    lse = jnp.log(jnp.sum(jnp.where(valid, jnp.exp(zm - m), 0.0),
                          axis=-1, keepdims=True)) + m
    o_ref[...] = z - lse                                      # lane-dense store


# ---------------------------------------------------------------------------
# pallas_call wrapper (all arrays fit comfortably in VMEM at these sizes)
# ---------------------------------------------------------------------------

_VMEM = pl.BlockSpec(memory_space=pltpu.MemorySpace.VMEM)
_SMEM = pl.BlockSpec(memory_space=pltpu.MemorySpace.SMEM)


@jax.jit
def agnnet_forward(params, x, adj):
    n = x.shape[0]
    out_channels = params["w2"].shape[1]
    out_pad = ((out_channels + 127) // 128) * 128             # lane-dense output

    w2p = jnp.zeros((params["w2"].shape[0], out_pad), jnp.float32)
    w2p = w2p.at[:, :out_channels].set(params["w2"])
    b2p = jnp.zeros((1, out_pad), jnp.float32)
    b2p = b2p.at[:, :out_channels].set(params["b2"])
    betas = jnp.array([[params["beta1"], params["beta2"]]], dtype=jnp.float32)

    out = pl.pallas_call(
        functools.partial(_agnnet_fwd_kernel, out_channels=out_channels),
        out_shape=jax.ShapeDtypeStruct((n, out_pad), jnp.float32),
        in_specs=[_VMEM, _VMEM, _VMEM, _VMEM, _SMEM, _VMEM, _VMEM],
        out_specs=_VMEM,
        compiler_params=pltpu.CompilerParams(vmem_limit_bytes=64 * 1024 * 1024),
    )(x, params["w1"], params["b1"].reshape(1, -1), adj, betas, w2p, b2p)

    return out[:, :out_channels]


# ---------------------------------------------------------------------------
# Params / graph preprocessing (plain JAX glue)
# ---------------------------------------------------------------------------

def init_params(key, in_channels, hidden, out_channels):
    # Matches torch.nn.Linear default init: U(-k, k), k = 1/sqrt(fan_in).
    k1, k2, k3, k4 = jax.random.split(key, 4)
    b1k = 1.0 / jnp.sqrt(in_channels)
    b2k = 1.0 / jnp.sqrt(hidden)
    return {
        "w1": jax.random.uniform(k1, (in_channels, hidden), jnp.float32, -b1k, b1k),
        "b1": jax.random.uniform(k2, (hidden,), jnp.float32, -b1k, b1k),
        "w2": jax.random.uniform(k3, (hidden, out_channels), jnp.float32, -b2k, b2k),
        "b2": jax.random.uniform(k4, (out_channels,), jnp.float32, -b2k, b2k),
        "beta1": 1.0,   # prop1: requires_grad=False, beta = 1
        "beta2": 1.0,   # prop2: requires_grad=True, beta initialized to 1
    }


def build_adjacency(edge_index, num_nodes):
    # edge_index: [2, E] int32; row 0 = source j, row 1 = target i.
    # int8 adjacency with self loops (AGNNConv adds self loops); rows are thus
    # guaranteed at least one valid entry, so the masked softmax never NaNs.
    src, dst = edge_index[0], edge_index[1]
    adj = jnp.zeros((num_nodes, num_nodes), jnp.int8).at[dst, src].set(1)
    adj = jnp.maximum(adj, jnp.eye(num_nodes, dtype=jnp.int8))
    return adj


# ---------------------------------------------------------------------------
# Main
# ---------------------------------------------------------------------------

if __name__ == "__main__":
    key = jax.random.PRNGKey(0)
    kx, ke, kp = jax.random.split(key, 3)

    num_nodes = 16
    in_channels = 4
    hidden = 64
    out_channels = 4
    num_edges = 32

    x = jax.random.normal(kx, (num_nodes, in_channels), jnp.float32)
    edge_index = jax.random.randint(ke, (2, num_edges), 0, num_nodes, jnp.int32)

    params = init_params(kp, in_channels, hidden, out_channels)
    adj = build_adjacency(edge_index, num_nodes)

    out = agnnet_forward(params, x, adj)
    out = jax.block_until_ready(out)

    assert out.shape == (num_nodes, out_channels)
    # rows of log_softmax should sum (in prob space) to ~1
    assert jnp.allclose(jnp.sum(jnp.exp(out), axis=1), 1.0, atol=1e-4)
    print("KERNEL_OK")
</pallas_src>

<mosaic_0001>
module attributes {stable_mosaic.version = 11 : i64} {
  func.func @_agnnet_fwd_kernel(%arg0: memref<16x4xf32, #tpu.memory_space<vmem>>, %arg1: memref<4x64xf32, #tpu.memory_space<vmem>>, %arg2: memref<1x64xf32, #tpu.memory_space<vmem>>, %arg3: memref<16x16xi8, #tpu.memory_space<vmem>>, %arg4: memref<1x2xf32, #tpu.memory_space<smem>>, %arg5: memref<64x128xf32, #tpu.memory_space<vmem>>, %arg6: memref<1x128xf32, #tpu.memory_space<vmem>>, %arg7: memref<16x128xf32, #tpu.memory_space<vmem>>) attributes {dimension_semantics = [], scalar_prefetch = 0 : i64, scratch_operands = 0 : i64, tpu.core_type = #tpu.core_type<tc>} {
    %c0 = arith.constant 0 : index
    %c0_0 = arith.constant 0 : index
    %0 = vector.load %arg0[%c0, %c0_0] : memref<16x4xf32, #tpu.memory_space<vmem>>, vector<16x4xf32>
    %c0_1 = arith.constant 0 : index
    %c0_2 = arith.constant 0 : index
    %1 = vector.load %arg1[%c0_1, %c0_2] : memref<4x64xf32, #tpu.memory_space<vmem>>, vector<4x64xf32>
    %cst = arith.constant dense<0.000000e+00> : vector<16x64xf32>
    %2 = tpu.matmul %0, %1, %cst {dimension_numbers = #tpu.dot_dimension_numbers<[1], [0], [0], [1], [0, 0, 1, 1], [], []>} : vector<16x4xf32>, vector<4x64xf32>, vector<16x64xf32> -> vector<16x64xf32>
    %c0_3 = arith.constant 0 : index
    %c0_4 = arith.constant 0 : index
    %3 = vector.load %arg2[%c0_3, %c0_4] : memref<1x64xf32, #tpu.memory_space<vmem>>, vector<1x64xf32>
    %4 = vector.broadcast %3 : vector<1x64xf32> to vector<16x64xf32>
    %5 = arith.addf %2, %4 : vector<16x64xf32>
    %cst_5 = arith.constant 0.000000e+00 : f32
    %6 = vector.broadcast %cst_5 : f32 to vector<16x64xf32>
    %7 = arith.maximumf %5, %6 : vector<16x64xf32>
    %c0_6 = arith.constant 0 : index
    %c0_7 = arith.constant 0 : index
    %8 = vector.load %arg3[%c0_6, %c0_7] : memref<16x16xi8, #tpu.memory_space<vmem>>, vector<16x16xi8>
    %c0_i8 = arith.constant 0 : i8
    %9 = vector.broadcast %c0_i8 : i8 to vector<16x16xi8>
    %10 = arith.cmpi ne, %8, %9 : vector<16x16xi8>
    %c0_8 = arith.constant 0 : index
    %c0_9 = arith.constant 0 : index
    %11 = memref.load %arg4[%c0_8, %c0_9] : memref<1x2xf32, #tpu.memory_space<smem>>
    %12 = arith.mulf %7, %7 : vector<16x64xf32>
    %cst_10 = arith.constant dense<0.000000e+00> : vector<16xf32>
    %13 = vector.multi_reduction <add>, %12, %cst_10 [1] : vector<16x64xf32> to vector<16xf32>
    %14 = vector.shape_cast %13 : vector<16xf32> to vector<16x1xf32>
    %cst_11 = arith.constant 1.000000e-24 : f32
    %15 = vector.broadcast %cst_11 : f32 to vector<16x1xf32>
    %16 = arith.maximumf %14, %15 : vector<16x1xf32>
    %17 = math.rsqrt %16 : vector<16x1xf32>
    %18 = vector.broadcast %17 : vector<16x1xf32> to vector<16x64xf32>
    %19 = arith.mulf %7, %18 : vector<16x64xf32>
    %cst_12 = arith.constant dense<0.000000e+00> : vector<16x16xf32>
    %20 = tpu.matmul %19, %19, %cst_12 {dimension_numbers = #tpu.dot_dimension_numbers<[1], [1], [0], [0], [0, 0, 1, 0], [], []>} : vector<16x64xf32>, vector<16x64xf32>, vector<16x16xf32> -> vector<16x16xf32>
    %21 = vector.broadcast %11 : f32 to vector<16x16xf32>
    %22 = arith.mulf %21, %20 : vector<16x16xf32>
    %cst_13 = arith.constant -1.000000e+30 : f32
    %23 = vector.broadcast %cst_13 : f32 to vector<16x16xf32>
    %24 = arith.select %10, %22, %23 : vector<16x16xi1>, vector<16x16xf32>
    %cst_14 = arith.constant dense<0xFF800000> : vector<16xf32>
    %25 = vector.multi_reduction <maximumf>, %24, %cst_14 [1] : vector<16x16xf32> to vector<16xf32>
    %26 = vector.shape_cast %25 : vector<16xf32> to vector<16x1xf32>
    %27 = vector.broadcast %26 : vector<16x1xf32> to vector<16x16xf32>
    %28 = arith.subf %24, %27 : vector<16x16xf32>
    %29 = math.exp %28 : vector<16x16xf32>
    %cst_15 = arith.constant dense<0.000000e+00> : vector<16xf32>
    %30 = vector.multi_reduction <add>, %29, %cst_15 [1] : vector<16x16xf32> to vector<16xf32>
    %31 = vector.shape_cast %30 : vector<16xf32> to vector<16x1xf32>
    %32 = tpu.reciprocal %31 {approx = true} : vector<16x1xf32> -> vector<16x1xf32>
    %33 = vector.broadcast %32 : vector<16x1xf32> to vector<16x16xf32>
    %34 = arith.mulf %29, %33 : vector<16x16xf32>
    %cst_16 = arith.constant dense<0.000000e+00> : vector<16x64xf32>
    %35 = tpu.matmul %34, %7, %cst_16 {dimension_numbers = #tpu.dot_dimension_numbers<[1], [0], [0], [1], [0, 0, 1, 1], [], []>} : vector<16x16xf32>, vector<16x64xf32>, vector<16x64xf32> -> vector<16x64xf32>
    %c0_17 = arith.constant 0 : index
    %c1 = arith.constant 1 : index
    %36 = memref.load %arg4[%c0_17, %c1] : memref<1x2xf32, #tpu.memory_space<smem>>
    %37 = arith.mulf %35, %35 : vector<16x64xf32>
    %cst_18 = arith.constant dense<0.000000e+00> : vector<16xf32>
    %38 = vector.multi_reduction <add>, %37, %cst_18 [1] : vector<16x64xf32> to vector<16xf32>
    %39 = vector.shape_cast %38 : vector<16xf32> to vector<16x1xf32>
    %cst_19 = arith.constant 1.000000e-24 : f32
    %40 = vector.broadcast %cst_19 : f32 to vector<16x1xf32>
    %41 = arith.maximumf %39, %40 : vector<16x1xf32>
    %42 = math.rsqrt %41 : vector<16x1xf32>
    %43 = vector.broadcast %42 : vector<16x1xf32> to vector<16x64xf32>
    %44 = arith.mulf %35, %43 : vector<16x64xf32>
    %cst_20 = arith.constant dense<0.000000e+00> : vector<16x16xf32>
    %45 = tpu.matmul %44, %44, %cst_20 {dimension_numbers = #tpu.dot_dimension_numbers<[1], [1], [0], [0], [0, 0, 1, 0], [], []>} : vector<16x64xf32>, vector<16x64xf32>, vector<16x16xf32> -> vector<16x16xf32>
    %46 = vector.broadcast %36 : f32 to vector<16x16xf32>
    %47 = arith.mulf %46, %45 : vector<16x16xf32>
    %cst_21 = arith.constant -1.000000e+30 : f32
    %48 = vector.broadcast %cst_21 : f32 to vector<16x16xf32>
    %49 = arith.select %10, %47, %48 : vector<16x16xi1>, vector<16x16xf32>
    %cst_22 = arith.constant dense<0xFF800000> : vector<16xf32>
    %50 = vector.multi_reduction <maximumf>, %49, %cst_22 [1] : vector<16x16xf32> to vector<16xf32>
    %51 = vector.shape_cast %50 : vector<16xf32> to vector<16x1xf32>
    %52 = vector.broadcast %51 : vector<16x1xf32> to vector<16x16xf32>
    %53 = arith.subf %49, %52 : vector<16x16xf32>
    %54 = math.exp %53 : vector<16x16xf32>
    %cst_23 = arith.constant dense<0.000000e+00> : vector<16xf32>
    %55 = vector.multi_reduction <add>, %54, %cst_23 [1] : vector<16x16xf32> to vector<16xf32>
    %56 = vector.shape_cast %55 : vector<16xf32> to vector<16x1xf32>
    %57 = tpu.reciprocal %56 {approx = true} : vector<16x1xf32> -> vector<16x1xf32>
    %58 = vector.broadcast %57 : vector<16x1xf32> to vector<16x16xf32>
    %59 = arith.mulf %54, %58 : vector<16x16xf32>
    %cst_24 = arith.constant dense<0.000000e+00> : vector<16x64xf32>
    %60 = tpu.matmul %59, %35, %cst_24 {dimension_numbers = #tpu.dot_dimension_numbers<[1], [0], [0], [1], [0, 0, 1, 1], [], []>} : vector<16x16xf32>, vector<16x64xf32>, vector<16x64xf32> -> vector<16x64xf32>
    %c0_25 = arith.constant 0 : index
    %c0_26 = arith.constant 0 : index
    %61 = vector.load %arg5[%c0_25, %c0_26] : memref<64x128xf32, #tpu.memory_space<vmem>>, vector<64x128xf32>
    %cst_27 = arith.constant dense<0.000000e+00> : vector<16x128xf32>
    %62 = tpu.matmul %60, %61, %cst_27 {dimension_numbers = #tpu.dot_dimension_numbers<[1], [0], [0], [1], [0, 0, 1, 1], [], []>} : vector<16x64xf32>, vector<64x128xf32>, vector<16x128xf32> -> vector<16x128xf32>
    %c0_28 = arith.constant 0 : index
    %c0_29 = arith.constant 0 : index
    %63 = vector.load %arg6[%c0_28, %c0_29] : memref<1x128xf32, #tpu.memory_space<vmem>>, vector<1x128xf32>
    %64 = vector.broadcast %63 : vector<1x128xf32> to vector<16x128xf32>
    %65 = arith.addf %62, %64 : vector<16x128xf32>
    %66 = tpu.iota {dimensions = array<i32: 1>} : vector<16x128xi32>
    %c4_i32 = arith.constant 4 : i32
    %67 = vector.broadcast %c4_i32 : i32 to vector<16x128xi32>
    %68 = arith.cmpi slt, %66, %67 : vector<16x128xi32>
    %cst_30 = arith.constant -1.000000e+30 : f32
    %69 = vector.broadcast %cst_30 : f32 to vector<16x128xf32>
    %70 = arith.select %68, %65, %69 : vector<16x128xi1>, vector<16x128xf32>
    %cst_31 = arith.constant dense<0xFF800000> : vector<16xf32>
    %71 = vector.multi_reduction <maximumf>, %70, %cst_31 [1] : vector<16x128xf32> to vector<16xf32>
    %72 = vector.shape_cast %71 : vector<16xf32> to vector<16x1xf32>
    %73 = vector.broadcast %72 : vector<16x1xf32> to vector<16x128xf32>
    %74 = arith.subf %70, %73 : vector<16x128xf32>
    %75 = math.exp %74 : vector<16x128xf32>
    %cst_32 = arith.constant 0.000000e+00 : f32
    %76 = vector.broadcast %cst_32 : f32 to vector<16x128xf32>
    %77 = arith.select %68, %75, %76 : vector<16x128xi1>, vector<16x128xf32>
    %cst_33 = arith.constant dense<0.000000e+00> : vector<16xf32>
    %78 = vector.multi_reduction <add>, %77, %cst_33 [1] : vector<16x128xf32> to vector<16xf32>
    %79 = vector.shape_cast %78 : vector<16xf32> to vector<16x1xf32>
    %80 = math.log %79 : vector<16x1xf32>
    %81 = arith.addf %80, %72 : vector<16x1xf32>
    %82 = vector.broadcast %81 : vector<16x1xf32> to vector<16x128xf32>
    %83 = arith.subf %65, %82 : vector<16x128xf32>
    %c0_34 = arith.constant 0 : index
    %c0_35 = arith.constant 0 : index
    %84 = vector.load %arg7[%c0_34, %c0_35] : memref<16x128xf32, #tpu.memory_space<vmem>>, vector<16x128xf32>
    tpu.vector_store %arg7[%c0_34, %c0_35], %83 {strides = array<i32>} : memref<16x128xf32, #tpu.memory_space<vmem>>, vector<16x128xf32>,
    return
  }
}

</mosaic_0001>

<bundles_post_ra>
// kernel: agnnet_forward.1
= control target key start
LH: loop header
LB: loop body
LE: loop exit
PB: predicated region body
PF: predicated region fallthrough
CT: control target
= control target key end

     0   :  { %12 = vsyncpa [#allocation3], 0  ;;  %s1363_s0 = inlined_call_operand.hbm [shape: f32[16,4], index: 0, kind: input, shape index: {}]   ;;  %s1364_s1 = inlined_call_operand.hbm [shape: f32[4,64], index: 1, kind: input, shape index: {}]   ;;  %s1365_s2 = inlined_call_operand.hbm [shape: f32[1,64], index: 2, kind: input, shape index: {}]   ;;  %s1366_s3 = inlined_call_operand.hbm [shape: s8[16,16], index: 3, kind: input, shape index: {}]   ;;  %s1367_s4 = inlined_call_operand.hbm [shape: f32[1,2], index: 4, kind: input, shape index: {}]   ;;  %s1368_s5 = inlined_call_operand.hbm [shape: f32[64,128], index: 5, kind: input, shape index: {}]   ;;  %s1369_s6 = inlined_call_operand.hbm [shape: f32[1,128], index: 6, kind: input, shape index: {}]   ;;  %s1370_s7 = inlined_call_operand.hbm [shape: f32[16,128], index: 7, kind: output, shape index: {}]  }
   0x1   :  { %13 = vsyncpa [#allocation7], 0 }
   0x2   :  { %14 = vsyncpa [#allocation10], 0 }
   0x3   :  { %15 = vsyncpa [#allocation5], 0 }
   0x4   :  { %16 = vsyncpa [#allocation14], 0 }
   0x5   :  { %17 = vsyncpa [#allocation4], 0  ;;  %s1142_s24 = smov [#allocation6]   ;;  %s1143_s26 = smov [#allocation9]  }
   0x6   :  { %s36_s25 = sshll.u32 %s1142_s24, 4  ;;  %s55_s27 = sshll.u32 %s1143_s26, 4  ;;  %s37_s25 = int_to_ptr.vmem [resolvable:$true] %s36_s25  ;;  %s1195_s27 = int_to_ptr.vmem [resolvable:$true] %s55_s27 }
   0x7   :  { %s964_s30 = scalar_lea.hbm %s1364_s1, 64 }
   0x8   :  { %p965_p0 = scmp.ne.s32.totalorder %s1364_s1, %s964_s30  ;;  %p968_p1 = scmp.lt.u32.totalorder %s964_s30, %s1364_s1 }
   0xa   :  { %p970_p2 = pnand %p968_p1, %p965_p0 }
   0xc   :  { %973 = shalt.err (!%p970_p2)
}
   0xd   :  { %s974_s12 = scalar_lea.vmem %s37_s25, 64  ;;  %p979_p4 = scmp.lt.s32.totalorder %s37_s25, %s37_s25 }
   0xe   :  { %p975_p3 = scmp.ne.s32.totalorder %s37_s25, %s974_s12  ;;  %p980_p5 = scmp.lt.s32.totalorder %s974_s12, %s974_s12 }
  0x10   :  { %p981_p6 = por %p980_p5, %p979_p4 }
  0x12   :  { %p982_p7 = pnand %p981_p6, %p975_p3 }
  0x14   :  { %985 = shalt.err (!%p982_p7)
}
  0x15   :  { %39 = dma.hbm_to_vmem [thread:$0]  %s1364_s1, 64, %s37_s25, [#allocation7]  }
  0x16   :  { %s986_s17 = scalar_lea.hbm %s1366_s3, 64 }
  0x17   :  { %p987_p8 = scmp.ne.s32.totalorder %s1366_s3, %s986_s17  ;;  %p990_p9 = scmp.lt.u32.totalorder %s986_s17, %s1366_s3 }
  0x19   :  { %p992_p10 = pnand %p990_p9, %p987_p8 }
  0x1b   :  { %995 = shalt.err (!%p992_p10)
}
  0x1c   :  { %s996_s22 = scalar_lea.vmem %s1195_s27, 64  ;;  %p1001_p12 = scmp.lt.s32.totalorder %s1195_s27, %s1195_s27 }
  0x1d   :  { %p997_p11 = scmp.ne.s32.totalorder %s1195_s27, %s996_s22  ;;  %p1002_p13 = scmp.lt.s32.totalorder %s996_s22, %s996_s22 }
  0x1f   :  { %p1003_p0 = por %p1002_p13, %p1001_p12 }
  0x21   :  { %p1004_p1 = pnand %p1003_p0, %p997_p11 }
  0x23   :  { %1007 = shalt.err (!%p1004_p1)
}
  0x24   :  { %s1144_s1 = smov 32   ;;  %s1145_s23 = smov 2  }
  0x25   :  { %61 = dma.hbm_to_vmem [thread:$0]  %s1366_s3, 64, %s1195_s27, [#allocation10], %s1144_s1, %s1144_s1, %s1145_s23  }
  0x26   :  { %s1146_s26 = smov [#allocation2]   ;;  %s1008_s8 = scalar_lea.hbm %s1363_s0, 256 }
  0x27   :  { %s23_s28 = sshll.u32 %s1146_s26, 4  ;;  %p1009_p2 = scmp.ne.s32.totalorder %s1363_s0, %s1008_s8  ;;  %s24_s28 = int_to_ptr.vmem [resolvable:$true] %s23_s28 }
  0x28   :  { %p1012_p3 = scmp.lt.u32.totalorder %s1008_s8, %s1363_s0 }
  0x2a   :  { %p1014_p4 = pnand %p1012_p3, %p1009_p2 }
  0x2c   :  { %1017 = shalt.err (!%p1014_p4)
}
  0x2d   :  { %s1018_s13 = scalar_lea.vmem %s24_s28, 256  ;;  %p1023_p6 = scmp.lt.s32.totalorder %s24_s28, %s24_s28 }
  0x2e   :  { %p1019_p5 = scmp.ne.s32.totalorder %s24_s28, %s1018_s13  ;;  %p1024_p7 = scmp.lt.s32.totalorder %s1018_s13, %s1018_s13 }
  0x30   :  { %p1025_p8 = por %p1024_p7, %p1023_p6 }
  0x32   :  { %p1026_p9 = pnand %p1025_p8, %p1019_p5 }
  0x34   :  { %1029 = shalt.err (!%p1026_p9)
}
  0x35   :  { %s1147_s3 = smov 128   ;;  %s1148_s27 = smov 8  }
  0x36   :  { %29 = dma.hbm_to_vmem [thread:$0]  %s1363_s0, 256, %s24_s28, [#allocation3], %s1147_s3, %s1147_s3, %s1148_s27  }
  0x37   :  { %s1149_s16 = smov [#allocation8]   ;;  %s1030_s20 = scalar_lea.hbm %s1365_s2, 16 }
  0x38   :  { %s46_s17 = sshll.u32 %s1149_s16, 4  ;;  %p1031_p10 = scmp.ne.s32.totalorder %s1365_s2, %s1030_s20  ;;  %s47_s17 = int_to_ptr.vmem [resolvable:$true] %s46_s17 }
  0x39   :  { %p1034_p11 = scmp.lt.u32.totalorder %s1030_s20, %s1365_s2 }
  0x3b   :  { %p1036_p12 = pnand %p1034_p11, %p1031_p10 }
  0x3d   :  { %1039 = shalt.err (!%p1036_p12)
}
  0x3e   :  { %s1040_s24 = scalar_lea.vmem %s47_s17, 16  ;;  %s1044_s0 = scalar_lea.vmem %s47_s17, 32 }
  0x3f   :  { %p1041_p13 = scmp.ne.s32.totalorder %s47_s17, %s1040_s24  ;;  %p1045_p0 = scmp.lt.s32.totalorder %s47_s17, %s47_s17 }
  0x40   :  { %p1046_p1 = scmp.lt.s32.totalorder %s1044_s0, %s1040_s24 }
  0x42   :  { %p1047_p2 = por %p1046_p1, %p1045_p0 }
  0x44   :  { %p1048_p3 = pnand %p1047_p2, %p1041_p13 }
  0x46   :  { %1051 = shalt.err (!%p1048_p3)
}
  0x47   :  { %49 = dma.hbm_to_vmem [thread:$0]  %s1365_s2, 16, %s47_s17, [#allocation7]  }
  0x48   :  { %s1052_s30 = scalar_lea.hbm %s1367_s4, 16 }
  0x49   :  { %p1053_p4 = scmp.ne.s32.totalorder %s1367_s4, %s1052_s30  ;;  %p1056_p5 = scmp.lt.u32.totalorder %s1052_s30, %s1367_s4 }
  0x4b   :  { %p1058_p6 = pnand %p1056_p5, %p1053_p4 }
  0x4d   :  { %1061 = shalt.err (!%p1058_p6)
}
  0x4e   :  { %s1150_s12 = smov [#allocation11]   ;;  %s1151_s2 = smov [#allocation12]  }
  0x4f   :  { %69 = dma.hbm_to_smem %s1367_s4, 16, %s1150_s12, [#allocation5]  }
  0x50   :  { %s75_s15 = sshll.u32 %s1151_s2, 4  ;;  %s1152_s16 = smov [#allocation13]   ;;  %s76_s15 = int_to_ptr.vmem [resolvable:$true] %s75_s15 }
  0x51   :  { %s88_s17 = sshll.u32 %s1152_s16, 4  ;;  %s1062_s20 = scalar_lea.hbm %s1368_s5, 1024  ;;  %s89_s17 = int_to_ptr.vmem [resolvable:$true] %s88_s17 }
  0x52   :  { %p1063_p7 = scmp.ne.s32.totalorder %s1368_s5, %s1062_s20  ;;  %p1066_p8 = scmp.lt.u32.totalorder %s1062_s20, %s1368_s5 }
  0x54   :  { %p1068_p9 = pnand %p1066_p8, %p1063_p7 }
  0x56   :  { %1071 = shalt.err (!%p1068_p9)
}
  0x57   :  { %s1072_s4 = scalar_lea.vmem %s76_s15, 1024  ;;  %p1077_p11 = scmp.lt.s32.totalorder %s76_s15, %s76_s15 }
  0x58   :  { %p1073_p10 = scmp.ne.s32.totalorder %s76_s15, %s1072_s4  ;;  %p1078_p12 = scmp.lt.s32.totalorder %s1072_s4, %s1072_s4 }
  0x5a   :  { %p1079_p13 = por %p1078_p12, %p1077_p11 }
  0x5c   :  { %p1080_p0 = pnand %p1079_p13, %p1073_p10 }
  0x5e   :  { %1083 = shalt.err (!%p1080_p0)
}
  0x5f   :  { %81 = dma.hbm_to_vmem [thread:$0]  %s1368_s5, 1024, %s76_s15, [#allocation10], %s1147_s3, %s1147_s3, %s1148_s27  }
  0x60   :  { %s1084_s28 = scalar_lea.hbm %s1369_s6, 16 }
  0x61   :  { %p1085_p1 = scmp.ne.s32.totalorder %s1369_s6, %s1084_s28  ;;  %p1088_p2 = scmp.lt.u32.totalorder %s1084_s28, %s1369_s6 }
  0x63   :  { %p1090_p3 = pnand %p1088_p2, %p1085_p1 }
  0x65   :  { %1093 = shalt.err (!%p1090_p3)
}
  0x66   :  { %s1094_s10 = scalar_lea.vmem %s89_s17, 16  ;;  %s1098_s11 = scalar_lea.vmem %s89_s17, 32 }
  0x67   :  { %p1095_p4 = scmp.ne.s32.totalorder %s89_s17, %s1094_s10  ;;  %p1099_p5 = scmp.lt.s32.totalorder %s89_s17, %s89_s17 }
  0x68   :  { %p1100_p6 = scmp.lt.s32.totalorder %s1098_s11, %s1094_s10 }
  0x6a   :  { %p1101_p7 = por %p1100_p6, %p1099_p5 }
  0x6c   :  { %p1102_p8 = pnand %p1101_p7, %p1095_p4 }
  0x6e   :  { %1105 = shalt.err (!%p1102_p8)
}
  0x6f   :  { %91 = dma.hbm_to_vmem [thread:$0]  %s1369_s6, 16, %s89_s17, [#allocation14]  }
  0x70   :  { %1128 = dma.done.wait [#allocation3], 256  }
  0x71   :  { %1129 = vsyncadd [#allocation3], 4294967040 }
  0x72   :  { %1130 = dma.done.wait [#allocation7], 80  }
  0x73   :  { %1131 = vsyncadd [#allocation7], 4294967216 }
  0x74   :  { %1132 = dma.done.wait [#allocation10], 64  }
  0x75   :  { %1133 = vsyncadd [#allocation10], 4294967232 }
  0x76   :  { %1134 = dma.done.wait [#allocation5], 16  }
  0x77   :  { %1135 = vsyncadd [#allocation5], 4294967280 }
  0x78   :  { %1136 = dma.done.wait [#allocation10], 1024  }
  0x79   :  { %1137 = vsyncadd [#allocation10], 4294966272 }
  0x7a   :  { %1138 = dma.done.wait [#allocation14], 16  }
  0x7b   :  { %1139 = vsyncadd [#allocation14], 4294967280 }
  0x7c   :  { %113 = sfence }
  0x7d   :  { %v118_v0 = vld [vmem:[#allocation6] sm:$0xf]  ;;  %vm133_vm0 = vcmask 1043456   ;;  %v116_v1 = vld [vmem:[#allocation2] sm:$0xff]  ;;  %vm126_vm1 = vcmask 31744   ;;  %v117_v2 = vld [vmem:[#allocation2 + $0x8] sm:$0xff] }
  0x7e   :  { %831 = vmatprep.subr.msk.mxu0 %vm133_vm0, %v118_v0  ;;  %833 = vmatprep.mubr.msk.f32.mxu0 %vm126_vm1, %v116_v1  ;;  %v782_v3 = vld [vmem:[#allocation8] ss:$0 sm:$0xff]  ;;  %vm221_vm2 = vcmask 523264   ;;  %v214_v25 = vld [vmem:[#allocation9] sm:$0x3]  ;;  %s218_s6 = sld [smem:[#allocation11]] }
  0x7f   :  { %832 = vmatpush3.msk.msra.mxu0 %vm133_vm0, %v118_v0  ;;  %vm1297_vm3 = vmpackc.low %vm221_vm2, %vm221_vm2  ;;  %v215_v26 = vld [vmem:[#allocation9 + $0x2] sm:$0x3]  ;;  %vm216_vm4 = vnez %v214_v25  ;;  %v1153_v27 = vmov 0   ;;  %vm326_vm7 = vcmask 130048   ;;  %s792_s13 = sld [smem:[#allocation11 + $0x1]]  ;;  %s1154_s14 = smov [#allocation15]  }
  0x80   :  { %834 = vmatmul.mubr.msk.f32.vlgmr.msra.gmra.mrb[0].mxu0 %vm126_vm1, %v117_v2  ;;  %vm217_vm5 = vnez %v215_v26  ;;  %v318_v28 = vsel %vm216_vm4, 16843009, %v1153_v27  ;;  %s766_s2 = sshll.u32 %s1154_s14, 4  ;;  %s767_s2 = int_to_ptr.vmem [resolvable:$true] %s766_s2 }
  0x81   :  { %v319_v29 = vsel %vm217_vm5, 16843009, %v1153_v27  ;;  %v320_v30 = vunpack.c.0.s8 %v318_v28  ;;  %s1106_s15 = scalar_lea.vmem %s767_s2, 256  ;;  %p1111_p10 = scmp.lt.s32.totalorder %s767_s2, %s767_s2 }
  0x82   :  { %v321_v32 = vunpack.c.0.s8 %v319_v29  ;;  %p1107_p9 = scmp.ne.s32.totalorder %s767_s2, %s1106_s15  ;;  %p1112_p11 = scmp.lt.s32.totalorder %s1106_s15, %s1106_s15 }
  0x83   :  { %vm1306_vm6 = vcmp.ne.s32.totalorder %v320_v30, 0  ;;  %v634_v30 = vld [vmem:[#allocation12] sm:$0xff] }
  0x84   :  { %v315_v31 = vstv %s218_s6  ;;  %vm1310_vm8 = vcmp.ne.s32.totalorder %v321_v32, 0  ;;  %p1113_p12 = por %p1112_p11, %p1111_p10 }
  0x86   :  { %p1114_p13 = pnand %p1113_p12, %p1107_p9 }
 0x153   :  { %v835_v4 = vpop.f32.mrb[0].mxu0 }
 0x154   :  { %v209_v5 = vadd.f32 %v835_v4, %v782_v3  ;;  %v203_v6 = vpop.f32.mrb[1].mxu0 }
 0x155   :  { %v204_v7 = vadd.f32 %v782_v3, %v203_v6 }
 0x156   :  { %v213_v8 = vmax.f32 %v209_v5, 0.0 }
 0x157   :  { %v212_v9 = vmax.f32 %v204_v7, 0.0 }
 0x158   :  { %v220_v12 = vmul.f32 %v213_v8, %v213_v8 }
 0x159   :  { %v219_v10 = vmul.f32 %v212_v9, %v212_v9  ;;  %v889_v24 = vpack.c.bf16 %v213_v8, %v212_v9 }
 0x15a   :  { %v225_v13 = vsel %vm221_vm2, %v220_v12, 0.0 }
 0x15b   :  { %v222_v11 = vsel %vm221_vm2, %v219_v10, 0.0 }
 0x15c   :  { %223 = vadd.xlane.f32.xlu0 %v222_v11  ;;  %v526_v11 = vstv %s792_s13 }
 0x160   :  { %226 = vadd.xlane.f32.xlu0 %v225_v13 }
 0x1e9   :  { %v224_v14 = vpop.xlane.xlu0 %223 }
 0x1ea   :  { %v228_v15 = vmax.f32 %v224_v14, 1e-24 }
 0x1ec   :  { %932 = vrsqrt.f32 %v228_v15 }
 0x1ed   :  { %v227_v16 = vpop.xlane.xlu0 %226 }
 0x1ee   :  { %v229_v17 = vmax.f32 %v227_v16, 1e-24 }
 0x1f0   :  { %934 = vrsqrt.f32 %v229_v17 }
 0x1f6   :  { %v933_v18 = vpop.eup %932 }
 0x1f7   :  { %v232_v19 = vmul.f32 %v933_v18, %v212_v9 }
 0x1f9   :  { %840 = vmatprep.mubr.msk.f32.mxu0 %vm221_vm2, %v232_v19 }
 0x1fa   :  { %v935_v20 = vpop.eup %934 }
 0x1fb   :  { %v233_v21 = vmul.f32 %v935_v20, %v213_v8 }
 0x1fd   :  { %v883_v23 = vpack.c.bf16 %v233_v21, %v232_v19 }
 0x1ff   :  { %885 = vmatprep.subr.msk.bf16.mxu0 %vm1297_vm3, %v883_v23 }
 0x200   :  { %888 = vmatpush3.bf16.xpose.msk.msra.mxu0 %vm1297_vm3, %v883_v23 }
 0x201   :  { %890 = vmatprep.subr.bf16.mxu0 %v889_v24 }
 0x207   :  { %841 = vmatmul.mubr.msk.f32.vlgmr.msra.gmra.mrb[2].mxu0 %vm221_vm2, %v233_v21 }
 0x208   :  { %892 = vmatpush3.bf16.msra.mxu0 %v889_v24 }
 0x2da   :  { %v842_v33 = vpop.f32.mrb[2].mxu0 }
 0x2db   :  { %v306_v34 = vpop.f32.mrb[3].mxu0  ;;  %v317_v36 = vmul.f32 %v842_v33, %v315_v31 }
 0x2dc   :  { %v316_v37 = vmul.f32 %v315_v31, %v306_v34  ;;  %v635_v31 = vld [vmem:[#allocation12 + $0x8] sm:$0xff] }
 0x2dd   :  { %v325_v41 = vsel %vm1310_vm8, %v317_v36, -1e+30  ;;  %v903_v32 = vpack.c.bf16 %v635_v31, %v634_v30  ;;  %v636_v36 = vld [vmem:[#allocation12 + $0x10] sm:$0xff] }
 0x2de   :  { %v324_v39 = vsel %vm1306_vm6, %v316_v37, -1e+30  ;;  %v330_v42 = vsel %vm326_vm7, %v325_v41, -inf  ;;  %v637_v37 = vld [vmem:[#allocation12 + $0x18] sm:$0xff] }
 0x2df   :  { %v327_v40 = vsel %vm326_vm7, %v324_v39, -inf }
 0x2e0   :  { %328 = vmax.xlane.f32.xlu1 %v327_v40 }
 0x2e4   :  { %331 = vmax.xlane.f32.xlu1 %v330_v42  ;;  %v638_v42 = vld [vmem:[#allocation12 + $0x20] sm:$0xff] }
 0x36d   :  { %v329_v43 = vpop.xlane.xlu1 %328 }
 0x36e   :  { %v333_v44 = vsub.f32 %v324_v39, %v329_v43  ;;  %v639_v43 = vld [vmem:[#allocation12 + $0x28] sm:$0xff] }
 0x370   :  { %v335_v45 = vmul.f32 1.442695, %v333_v44  ;;  %v911_v44 = vpack.c.bf16 %v639_v43, %v638_v42 }
 0x371   :  { %v332_v46 = vpop.xlane.xlu1 %331 }
 0x372   :  { %936 = vpow2.f32 %v335_v45  ;;  %v334_v47 = vsub.f32 %v325_v41, %v332_v46  ;;  %v907_v41 = vpack.c.bf16 %v637_v37, %v636_v36  ;;  %v640_v45 = vld [vmem:[#allocation12 + $0x30] sm:$0xff]  ;;  %v641_v46 = vld [vmem:[#allocation12 + $0x38] sm:$0xff] }
 0x374   :  { %v337_v48 = vmul.f32 1.442695, %v334_v47  ;;  %v915_v47 = vpack.c.bf16 %v641_v46, %v640_v45 }
 0x376   :  { %938 = vpow2.f32 %v337_v48 }
 0x37c   :  { %v937_v49 = vpop.eup %936 }
 0x37d   :  { %v339_v50 = vsel %vm326_vm7, %v937_v49, 0.0 }
 0x37e   :  { %340 = vadd.xlane.f32.xlu0 %v339_v50  ;;  %v730_v50 = vlaneseq }
 0x380   :  { %v939_v51 = vpop.eup %938 }
 0x381   :  { %v342_v52 = vsel %vm326_vm7, %v939_v51, 0.0 }
 0x382   :  { %343 = vadd.xlane.f32.xlu1 %v342_v52  ;;  %v799_v52 = vld [vmem:[#allocation13] ss:$0 sm:$0xff] }
 0x40b   :  { %v341_v53 = vpop.xlane.xlu0 %340 }
 0x40c   :  { %940 = vrcp.f32 %v341_v53 }
 0x40f   :  { %v344_v54 = vpop.xlane.xlu1 %343 }
 0x410   :  { %942 = vrcp.f32 %v344_v54 }
 0x416   :  { %v941_v55 = vpop.eup %940 }
 0x417   :  { %v347_v56 = vmul.f32 %v941_v55, %v937_v49 }
 0x419   :  { %847 = vmatprep.mubr.msk.f32.mxu0 %vm326_vm7, %v347_v56 }
 0x41a   :  { %v943_v57 = vpop.eup %942 }
 0x41b   :  { %v348_v58 = vmul.f32 %v943_v57, %v939_v51  ;;  %v731_v51 = vand.u32 127, %v730_v50 }
 0x41d   :  { %848 = vmatmul.mubr.msk.f32.vlgmr.msra.gmra.mrb[4].mxu0 %vm326_vm7, %v348_v58  ;;  %vm732_vm9 = vcmp.lt.s32.totalorder %v731_v51, 4 }
 0x4f0   :  { %v849_v59 = vpop.f32.mrb[4].mxu0 }
 0x4f1   :  { %v421_v60 = vpop.f32.mrb[5].mxu0  ;;  %v432_v61 = vmul.f32 %v849_v59, %v849_v59 }
 0x4f2   :  { %v899_v62 = vpack.c.bf16 %v849_v59, %v421_v60  ;;  %v431_v63 = vmul.f32 %v421_v60, %v421_v60 }
 0x4f3   :  { %v436_v0 = vsel %vm221_vm2, %v432_v61, 0.0 }
 0x4f4   :  { %437 = vadd.xlane.f32.xlu1 %v436_v0  ;;  %900 = vmatprep.subr.bf16.mxu1 %v899_v62  ;;  %v433_v1 = vsel %vm221_vm2, %v431_v63, 0.0 }
 0x4f5   :  { %902 = vmatpush3.bf16.msra.mxu1 %v899_v62  ;;  %434 = vadd.xlane.f32.xlu0 %v433_v1 }
 0x4f6   :  { %904 = vmatprep.subr.bf16.mxu1 %v903_v32 }
 0x581   :  { %v438_v2 = vpop.xlane.xlu1 %437 }
 0x582   :  { %v440_v3 = vmax.f32 %v438_v2, 1e-24  ;;  %v435_v4 = vpop.xlane.xlu0 %434 }
 0x583   :  { %v439_v5 = vmax.f32 %v435_v4, 1e-24 }
 0x584   :  { %944 = vrsqrt.f32 %v440_v3 }
 0x585   :  { %946 = vrsqrt.f32 %v439_v5 }
 0x58e   :  { %v945_v6 = vpop.eup %944 }
 0x58f   :  { %v947_v7 = vpop.eup %946  ;;  %v444_v8 = vmul.f32 %v945_v6, %v849_v59 }
 0x590   :  { %v443_v9 = vmul.f32 %v947_v7, %v421_v60 }
 0x592   :  { %854 = vmatprep.mubr.msk.f32.mxu0 %vm221_vm2, %v443_v9  ;;  %v893_v10 = vpack.c.bf16 %v444_v8, %v443_v9 }
 0x594   :  { %895 = vmatprep.subr.msk.bf16.mxu0 %vm1297_vm3, %v893_v10 }
 0x595   :  { %898 = vmatpush3.bf16.xpose.msk.msra.mxu0 %vm1297_vm3, %v893_v10 }
 0x59c   :  { %855 = vmatmul.mubr.msk.f32.vlgmr.msra.gmra.mrb[6].mxu0 %vm221_vm2, %v444_v8 }
 0x66f   :  { %v856_v12 = vpop.f32.mrb[6].mxu0 }
 0x670   :  { %v528_v13 = vmul.f32 %v856_v12, %v526_v11  ;;  %v517_v14 = vpop.f32.mrb[7].mxu0 }
 0x671   :  { %v527_v15 = vmul.f32 %v526_v11, %v517_v14 }
 0x672   :  { %v530_v16 = vsel %vm1310_vm8, %v528_v13, -1e+30 }
 0x673   :  { %v534_v17 = vsel %vm326_vm7, %v530_v16, -inf  ;;  %v529_v18 = vsel %vm1306_vm6, %v527_v15, -1e+30 }
 0x674   :  { %535 = vmax.xlane.f32.xlu1 %v534_v17  ;;  %v531_v19 = vsel %vm326_vm7, %v529_v18, -inf }
 0x675   :  { %532 = vmax.xlane.f32.xlu0 %v531_v19 }
 0x701   :  { %v536_v20 = vpop.xlane.xlu1 %535 }
 0x702   :  { %v538_v21 = vsub.f32 %v530_v16, %v536_v20  ;;  %v533_v22 = vpop.xlane.xlu0 %532 }
 0x703   :  { %v537_v23 = vsub.f32 %v529_v18, %v533_v22 }
 0x704   :  { %v541_v24 = vmul.f32 1.442695, %v538_v21 }
 0x705   :  { %v539_v25 = vmul.f32 1.442695, %v537_v23 }
 0x706   :  { %948 = vpow2.f32 %v541_v24 }
 0x707   :  { %950 = vpow2.f32 %v539_v25 }
 0x710   :  { %v949_v26 = vpop.eup %948 }
 0x711   :  { %v951_v27 = vpop.eup %950  ;;  %v546_v28 = vsel %vm326_vm7, %v949_v26, 0.0 }
 0x712   :  { %547 = vadd.xlane.f32.xlu1 %v546_v28  ;;  %v543_v29 = vsel %vm326_vm7, %v951_v27, 0.0 }
 0x713   :  { %544 = vadd.xlane.f32.xlu0 %v543_v29 }
 0x79f   :  { %v548_v33 = vpop.xlane.xlu1 %547 }
 0x7a0   :  { %952 = vrcp.f32 %v548_v33  ;;  %v545_v34 = vpop.xlane.xlu0 %544 }
 0x7a1   :  { %954 = vrcp.f32 %v545_v34 }
 0x7aa   :  { %v953_v35 = vpop.eup %952 }
 0x7ab   :  { %v955_v38 = vpop.eup %954  ;;  %v552_v40 = vmul.f32 %v953_v35, %v949_v26 }
 0x7ac   :  { %v551_v39 = vmul.f32 %v955_v38, %v951_v27 }
 0x7ae   :  { %861 = vmatprep.mubr.msk.f32.mxu1 %vm326_vm7, %v551_v39 }
 0x7af   :  { %862 = vmatmul.mubr.msk.f32.vlgmr.msra.gmra.mrb[0].mxu1 %vm326_vm7, %v552_v40 }
 0x7b0   :  { %906 = vmatpush3.bf16.msra.mxu1 %v903_v32 }
 0x7b1   :  { %908 = vmatprep.subr.bf16.mxu1 %v907_v41 }
 0x7b4   :  { %910 = vmatpush3.bf16.msra.mxu1 %v907_v41 }
 0x7b5   :  { %912 = vmatprep.subr.bf16.mxu1 %v911_v44 }
 0x7b8   :  { %914 = vmatpush3.bf16.msra.mxu1 %v911_v44 }
 0x7b9   :  { %916 = vmatprep.subr.bf16.mxu1 %v915_v47 }
 0x7bc   :  { %918 = vmatpush3.bf16.msra.mxu1 %v915_v47 }
 0x882   :  { %v863_v48 = vpop.f32.mrb[0].mxu1 }
 0x883   :  { %v625_v49 = vpop.f32.mrb[1].mxu1 }
 0x884   :  { %880 = vmatprep.mubr.msk.f32.mxu1 %vm221_vm2, %v625_v49 }
 0x885   :  { %881 = vmatmul.mubr.msk.f32.vlgmr.msra.gmra.mrb[2].mxu1 %vm221_vm2, %v863_v48 }
 0x958   :  { %v882_v53 = vpop.f32.mrb[2].mxu1 }
 0x959   :  { %v727_v54 = vadd.f32 %v882_v53, %v799_v52  ;;  %v721_v55 = vpop.f32.mrb[3].mxu1 }
 0x95a   :  { %v722_v56 = vadd.f32 %v799_v52, %v721_v55 }
 0x95b   :  { %v734_v57 = vsel %vm732_vm9, %v727_v54, -1e+30 }
 0x95c   :  { %737 = vmax.xlane.f32.xlu1 %v734_v57  ;;  %v733_v58 = vsel %vm732_vm9, %v722_v56, -1e+30 }
 0x95d   :  { %735 = vmax.xlane.f32.xlu0 %v733_v58 }
 0x9e9   :  { %v738_v59 = vpop.xlane.xlu1 %737 }
 0x9ea   :  { %v740_v60 = vsub.f32 %v734_v57, %v738_v59  ;;  %v736_v61 = vpop.xlane.xlu0 %735 }
 0x9eb   :  { %v739_v62 = vsub.f32 %v733_v58, %v736_v61 }
 0x9ec   :  { %v743_v63 = vmul.f32 1.442695, %v740_v60 }
 0x9ed   :  { %v741_v0 = vmul.f32 1.442695, %v739_v62 }
 0x9ee   :  { %956 = vpow2.f32 %v743_v63 }
 0x9ef   :  { %958 = vpow2.f32 %v741_v0 }
 0x9f8   :  { %v957_v1 = vpop.eup %956 }
 0x9f9   :  { %v959_v2 = vpop.eup %958  ;;  %v746_v3 = vsel %vm732_vm9, %v957_v1, 0.0 }
 0x9fa   :  { %749 = vadd.xlane.f32.xlu1 %v746_v3  ;;  %v745_v4 = vsel %vm732_vm9, %v959_v2, 0.0 }
 0x9fb   :  { %747 = vadd.xlane.f32.xlu0 %v745_v4 }
 0xa87   :  { %v750_v5 = vpop.xlane.xlu1 %749 }
 0xa88   :  { %960 = vlog2.f32 %v750_v5  ;;  %v748_v6 = vpop.xlane.xlu0 %747 }
 0xa89   :  { %962 = vlog2.f32 %v748_v6 }
 0xa92   :  { %v961_v7 = vpop.eup %960 }
 0xa93   :  { %v963_v8 = vpop.eup %962  ;;  %v754_v9 = vmul.f32 0.6931472, %v961_v7 }
 0xa94   :  { %v752_v10 = vmul.f32 0.6931472, %v963_v8 }
 0xa95   :  { %v756_v11 = vadd.f32 %v754_v9, %v738_v59 }
 0xa96   :  { %v755_v12 = vadd.f32 %v752_v10, %v736_v61 }
 0xa97   :  { %v758_v13 = vsub.f32 %v727_v54, %v756_v11 }
 0xa98   :  { %v757_v14 = vsub.f32 %v722_v56, %v755_v12 }
 0xa99   :  { %760 = vst [vmem:[#allocation15 + $0x8] sm:$0xff] %v758_v13 }
 0xa9a   :  { %759 = vst [vmem:[#allocation15] sm:$0xff] %v757_v14 }
 0xa9b   :  { %1117 = shalt.err (!%p1114_p13)
}
 0xa9c   :  { %s1118_s18 = scalar_lea.hbm %s1370_s7, 256 }
 0xa9d   :  { %p1119_p0 = scmp.ne.s32.totalorder %s1370_s7, %s1118_s18  ;;  %p1122_p1 = scmp.lt.u32.totalorder %s1118_s18, %s1370_s7 }
 0xa9f   :  { %p1124_p2 = pnand %p1122_p1, %p1119_p0 }
 0xaa1   :  { %1127 = shalt.err (!%p1124_p2)
}
 0xaa2   :  { %772 = dma.vmem_to_hbm [thread:$0]  %s767_s2, 256, %s1370_s7, [#allocation4], %s1147_s3, %s1147_s3, %s1148_s27  }
 0xaa3   :  { %1140 = dma.done.wait [#allocation4], 256  }
 0xaa4   :  { %1141 = vsyncadd [#allocation4], 4294967040 }
 0xaa5   :  { %776 = vsyncpa [#allocation3], 1 }
 0xaa6   :  { %777 = vsyncpa [#allocation7], 1 }
 0xaa7   :  { %778 = vsyncpa [#allocation10], 1 }
 0xaa8   :  { %779 = vsyncpa [#allocation14], 1 }
 0xaa9   :  { %780 = vsyncpa [#allocation4], 1 }
 0xaaa   :  { %781 = vsyncpa [#allocation5], 1 }

</bundles_post_ra>
